<compile_context>
chip_gen: v5e
topology: v5e:2x2
jax: 0.10.0
libtpu: 0.0.40
codegen_flags: <defaults>
</compile_context>

<pallas_src>
import functools

import jax
import jax.numpy as jnp
from jax.experimental import pallas as pl
from jax.experimental.pallas import tpu as pltpu


def _gathered_loss(x_ref, t_ref, w_ref, *, ignore_index, n_rows):
    """Per-row loss and effective per-row weight for one (TM, C) block."""
    tm, c = x_ref.shape
    x = x_ref[...].astype(jnp.float32)            # (TM, C), cast in-kernel
    t = t_ref[...]                                # (TM, 1) int32 class indices
    w = w_ref[...].astype(jnp.float32)            # (1, C)  class weights

    # Global row index: masks rows past the true M (ragged last block) and
    # rows whose target equals ignore_index.
    row = pl.program_id(0) * tm + jax.lax.broadcasted_iota(jnp.int32, (tm, 1), 0)
    valid = (row < n_rows) & (t != ignore_index)  # (TM, 1)

    # One-hot gather along the class (lane) axis: picked[n] = x[n, t[n]].
    col = jax.lax.broadcasted_iota(jnp.int32, (tm, c), 1)
    onehot = col == t                             # (TM, C), broadcast of t
    picked = jnp.sum(jnp.where(onehot, x, 0.0), axis=1, keepdims=True)  # (TM,1)
    w_n = jnp.sum(jnp.where(onehot, w, 0.0), axis=1, keepdims=True)     # (TM,1)

    w_n = jnp.where(valid, w_n, 0.0)
    loss = jnp.where(valid, -w_n * picked, 0.0)   # where() masks OOB garbage
    return loss, w_n


def _nll_none_kernel(x_ref, t_ref, w_ref, out_ref, *, ignore_index, n_rows):
    loss, _ = _gathered_loss(x_ref, t_ref, w_ref,
                             ignore_index=ignore_index, n_rows=n_rows)
    out_ref[...] = loss


def _nll_reduce_kernel(x_ref, t_ref, w_ref, out_ref, lsum_ref, wsum_ref, *,
                       ignore_index, n_rows, mean):
    pid = pl.program_id(0)

    @pl.when(pid == 0)
    def _():
        lsum_ref[...] = jnp.zeros_like(lsum_ref)
        wsum_ref[...] = jnp.zeros_like(wsum_ref)

    loss, w_n = _gathered_loss(x_ref, t_ref, w_ref,
                               ignore_index=ignore_index, n_rows=n_rows)
    lsum_ref[...] += jnp.sum(loss, axis=0, keepdims=True)
    wsum_ref[...] += jnp.sum(w_n, axis=0, keepdims=True)

    @pl.when(pid == pl.num_programs(0) - 1)
    def _():
        if mean:
            out_ref[...] = lsum_ref[...] / wsum_ref[...]
        else:
            out_ref[...] = lsum_ref[...]


def _choose_block_rows(m, c, itemsize, block_rows=None):
    if block_rows is not None:
        tm = max(8, (int(block_rows) // 8) * 8)
    else:
        # ~1 MiB of input per block: double-buffered this stays well under the
        # scoped-VMEM default on every generation (incl. v7x's 64 MiB VMEM),
        # while blocks are big enough to hit ~85% of HBM roofline.
        tm = (1 << 20) // max(1, c * itemsize)
        tm = max(8, min(tm, 1024))
        tm = (tm // 8) * 8
    # No point in a block taller than M rounded up to a sublane multiple.
    tm = min(tm, ((m + 7) // 8) * 8)
    return max(tm, 8)


def nll_loss(input, target, *, weight=None, ignore_index=-100,
             reduction="mean", block_rows=None):
    """Pallas-TPU NLLLoss forward (log-probabilities in, loss out)."""
    x = jnp.asarray(input)
    t = jnp.asarray(target)

    if x.ndim == 1:                       # (C,) input, () target
        c = x.shape[0]
        x2 = x.reshape(1, c)
        t_flat = jnp.reshape(t, (1,))
        out_shape_none = ()
    elif x.ndim == 2:                     # (N, C) input, (N,) target
        c = x.shape[1]
        x2 = x
        t_flat = t.reshape(-1)
        out_shape_none = (x.shape[0],)
    else:                                 # (N, C, d1, ..., dK)
        c = x.shape[1]
        out_shape_none = (x.shape[0],) + tuple(x.shape[2:])
        # Move classes to the minor (lane) axis, flatten batch+spatial.
        x2 = jnp.moveaxis(x, 1, -1).reshape(-1, c)
        t_flat = t.reshape(-1)

    m = x2.shape[0]
    t2 = t_flat.astype(jnp.int32).reshape(m, 1)
    if weight is None:
        w2 = jnp.ones((1, c), jnp.float32)
    else:
        w2 = jnp.asarray(weight).reshape(1, c)

    tm = _choose_block_rows(m, c, x2.dtype.itemsize, block_rows)
    nb = (m + tm - 1) // tm

    in_specs = [
        pl.BlockSpec((tm, c), lambda i: (i, 0)),   # log-probs (native dtype)
        pl.BlockSpec((tm, 1), lambda i: (i, 0)),   # targets
        pl.BlockSpec((1, c), lambda i: (0, 0)),    # class weights (resident)
    ]

    if reduction == "none":
        kernel = functools.partial(_nll_none_kernel,
                                   ignore_index=int(ignore_index), n_rows=m)
        out = pl.pallas_call(
            kernel,
            out_shape=jax.ShapeDtypeStruct((m, 1), jnp.float32),
            grid=(nb,),
            in_specs=in_specs,
            out_specs=pl.BlockSpec((tm, 1), lambda i: (i, 0)),
            compiler_params=pltpu.CompilerParams(
                dimension_semantics=("parallel",)),
        )(x2, t2, w2)
        return out.reshape(out_shape_none)

    if reduction not in ("mean", "sum"):
        raise ValueError(f"unknown reduction: {reduction!r}")

    # TODO(synk): on v7x the scalar reduction axis is 'arbitrary' (single TC);
    # a per-core partial-sum variant would recover the second core's HBM BW.
    kernel = functools.partial(_nll_reduce_kernel,
                               ignore_index=int(ignore_index), n_rows=m,
                               mean=(reduction == "mean"))
    out = pl.pallas_call(
        kernel,
        out_shape=jax.ShapeDtypeStruct((1, 1), jnp.float32),
        grid=(nb,),
        in_specs=in_specs,
        out_specs=pl.BlockSpec((1, 1), lambda i: (0, 0)),
        scratch_shapes=[pltpu.VMEM((1, 1), jnp.float32),   # sum of losses
                        pltpu.VMEM((1, 1), jnp.float32)],  # sum of weights
        compiler_params=pltpu.CompilerParams(
            dimension_semantics=("arbitrary",)),
    )(x2, t2, w2)
    return out[0, 0]


class NLLLoss:
    """Drop-in (forward-only) equivalent of torch.nn.NLLLoss."""

    def __init__(self, weight=None, size_average=None, ignore_index=-100,
                 reduce=None, reduction="mean"):
        if size_average is not None or reduce is not None:
            reduce_ = True if reduce is None else reduce
            size_average_ = True if size_average is None else size_average
            if not reduce_:
                reduction = "none"
            elif size_average_:
                reduction = "mean"
            else:
                reduction = "sum"
        self.weight = weight
        self.ignore_index = ignore_index
        self.reduction = reduction

    def __call__(self, input, target):
        return nll_loss(input, target, weight=self.weight,
                        ignore_index=self.ignore_index,
                        reduction=self.reduction)


# ---------------- plain-JAX reference (for correctness checks) ---------------
def _nll_ref(x, t, weight, ignore_index, reduction):
    x = jnp.asarray(x, jnp.float32)
    t = jnp.asarray(t)
    if x.ndim == 1:
        x = x[None]
        t = jnp.reshape(t, (1,))
        spatial = ()
    elif x.ndim == 2:
        spatial = (x.shape[0],)
    else:
        c = x.shape[1]
        spatial = (x.shape[0],) + tuple(x.shape[2:])
        x = jnp.moveaxis(x, 1, -1).reshape(-1, c)
        t = t.reshape(-1)
    m, c = x.shape
    t = t.astype(jnp.int32)
    tc = jnp.clip(t, 0, c - 1)
    picked = jnp.take_along_axis(x, tc[:, None], axis=1)[:, 0]
    w = jnp.ones((c,), jnp.float32) if weight is None else jnp.asarray(weight, jnp.float32)
    wn = jnp.where(t != ignore_index, w[tc], 0.0)
    loss = jnp.where(t != ignore_index, -wn * picked, 0.0)
    if reduction == "none":
        return loss.reshape(spatial)
    if reduction == "sum":
        return jnp.sum(loss)
    return jnp.sum(loss) / jnp.sum(wn)


if __name__ == "__main__":
    key = jax.random.PRNGKey(0)
    k1, k2, k3, k4, k5, k6, k7 = jax.random.split(key, 7)
    ok = True

    # Case 1: classic (N, C) = (8, 5), weighted, with an ignored target.
    N, C = 8, 5
    logp = jax.nn.log_softmax(jax.random.normal(k1, (N, C), dtype=jnp.float32), axis=-1)
    target = jax.random.randint(k2, (N,), 0, C).at[3].set(-100)
    weight = jax.random.uniform(k3, (C,), minval=0.5, maxval=1.5, dtype=jnp.float32)
    for red in ("mean", "sum", "none"):
        out = jax.block_until_ready(
            NLLLoss(weight=weight, ignore_index=-100, reduction=red)(logp, target))
        ref = _nll_ref(logp, target, weight, -100, red)
        ok &= out.shape == ref.shape and bool(jnp.allclose(out, ref, atol=1e-5, rtol=1e-5))

    # Unweighted default ('mean', ignore_index=-100).
    out = jax.block_until_ready(NLLLoss()(logp, target))
    ok &= bool(jnp.allclose(out, _nll_ref(logp, target, None, -100, "mean"),
                            atol=1e-5, rtol=1e-5))

    # Case 2: K-dimensional loss, (N, C, H, W) = (2, 4, 8, 8).
    N2, C2, H, W = 2, 4, 8, 8
    logp2 = jax.nn.log_softmax(jax.random.normal(k4, (N2, C2, H, W), dtype=jnp.float32), axis=1)
    target2 = jax.random.randint(k5, (N2, H, W), 0, C2)
    for red in ("mean", "none"):
        out = jax.block_until_ready(NLLLoss(reduction=red)(logp2, target2))
        ref = _nll_ref(logp2, target2, None, -100, red)
        ok &= out.shape == ref.shape and bool(jnp.allclose(out, ref, atol=1e-5, rtol=1e-5))

    # Case 3: force a multi-block grid with a ragged tail (M=20, block_rows=8)
    # to exercise the tiled/masked path.
    N3, C3 = 20, 5
    logp3 = jax.nn.log_softmax(jax.random.normal(k6, (N3, C3), dtype=jnp.float32), axis=-1)
    target3 = jax.random.randint(k7, (N3,), 0, C3)
    for red in ("mean", "sum", "none"):
        out = jax.block_until_ready(
            nll_loss(logp3, target3, ignore_index=-100, reduction=red, block_rows=8))
        ref = _nll_ref(logp3, target3, None, -100, red)
        ok &= out.shape == ref.shape and bool(jnp.allclose(out, ref, atol=1e-5, rtol=1e-5))

    assert ok, "Pallas NLLLoss does not match reference"
    print("KERNEL_OK")
</pallas_src>

<mosaic_0001>
module attributes {stable_mosaic.version = 11 : i64} {
  func.func @_nll_reduce_kernel(%arg0: i32, %arg1: memref<8x5xf32, #tpu.memory_space<vmem>>, %arg2: memref<8x1xi32, #tpu.memory_space<vmem>>, %arg3: memref<1x5xf32, #tpu.memory_space<vmem>>, %arg4: memref<1x1xf32, #tpu.memory_space<vmem>>, %arg5: memref<1x1xf32, #tpu.memory_space<vmem>>, %arg6: memref<1x1xf32, #tpu.memory_space<vmem>>) attributes {dimension_semantics = [#tpu.dimension_semantics<arbitrary>], iteration_bounds = array<i64: 1>, scalar_prefetch = 0 : i64, scratch_operands = 2 : i64, tpu.core_type = #tpu.core_type<tc>, window_params = [{transform_indices = @transform_0, window_bounds = array<i64: 8, 5>}, {transform_indices = @transform_1, window_bounds = array<i64: 8, 1>}, {pipeline_mode = #tpu.pipeline_mode<synchronous>, transform_indices = @transform_2, window_bounds = array<i64: 1, 5>}, {pipeline_mode = #tpu.pipeline_mode<synchronous>, transform_indices = @transform_3, window_bounds = array<i64: 1, 1>}]} {
    %c0_i32 = arith.constant 0 : i32
    %0 = arith.cmpi eq, %arg0, %c0_i32 : i32
    %1 = arith.extui %0 : i1 to i32
    %c0_i32_0 = arith.constant 0 : i32
    %2 = arith.cmpi ne, %1, %c0_i32_0 : i32
    scf.if %2 {
      %cst_25 = arith.constant 0.000000e+00 : f32
      %48 = vector.broadcast %cst_25 : f32 to vector<1x1xf32>
      %c0_26 = arith.constant 0 : index
      %c0_27 = arith.constant 0 : index
      %49 = vector.load %arg5[%c0_26, %c0_27] : memref<1x1xf32, #tpu.memory_space<vmem>>, vector<1x1xf32>
      tpu.vector_store %arg5[%c0_26, %c0_27], %48 {strides = array<i32>} : memref<1x1xf32, #tpu.memory_space<vmem>>, vector<1x1xf32>,
      %cst_28 = arith.constant 0.000000e+00 : f32
      %50 = vector.broadcast %cst_28 : f32 to vector<1x1xf32>
      %c0_29 = arith.constant 0 : index
      %c0_30 = arith.constant 0 : index
      %51 = vector.load %arg6[%c0_29, %c0_30] : memref<1x1xf32, #tpu.memory_space<vmem>>, vector<1x1xf32>
      tpu.vector_store %arg6[%c0_29, %c0_30], %50 {strides = array<i32>} : memref<1x1xf32, #tpu.memory_space<vmem>>, vector<1x1xf32>,
    } else {
    }
    %c0 = arith.constant 0 : index
    %c0_1 = arith.constant 0 : index
    %3 = vector.load %arg1[%c0, %c0_1] : memref<8x5xf32, #tpu.memory_space<vmem>>, vector<8x5xf32>
    %c0_2 = arith.constant 0 : index
    %c0_3 = arith.constant 0 : index
    %4 = vector.load %arg2[%c0_2, %c0_3] : memref<8x1xi32, #tpu.memory_space<vmem>>, vector<8x1xi32>
    %c0_4 = arith.constant 0 : index
    %c0_5 = arith.constant 0 : index
    %5 = vector.load %arg3[%c0_4, %c0_5] : memref<1x5xf32, #tpu.memory_space<vmem>>, vector<1x5xf32>
    %c8_i32 = arith.constant 8 : i32
    %6 = arith.muli %arg0, %c8_i32 : i32
    %7 = tpu.iota {dimensions = array<i32: 0>} : vector<8x1xi32>
    %8 = vector.broadcast %6 : i32 to vector<8x1xi32>
    %9 = arith.addi %8, %7 : vector<8x1xi32>
    %c8_i32_6 = arith.constant 8 : i32
    %10 = vector.broadcast %c8_i32_6 : i32 to vector<8x1xi32>
    %11 = arith.cmpi slt, %9, %10 : vector<8x1xi32>
    %c-100_i32 = arith.constant -100 : i32
    %12 = vector.broadcast %c-100_i32 : i32 to vector<8x1xi32>
    %13 = arith.cmpi ne, %4, %12 : vector<8x1xi32>
    %14 = arith.andi %11, %13 : vector<8x1xi1>
    %15 = tpu.iota {dimensions = array<i32: 1>} : vector<8x5xi32>
    %16 = vector.broadcast %4 : vector<8x1xi32> to vector<8x5xi32>
    %17 = arith.cmpi eq, %15, %16 : vector<8x5xi32>
    %cst = arith.constant 0.000000e+00 : f32
    %18 = vector.broadcast %cst : f32 to vector<8x5xf32>
    %19 = arith.select %17, %3, %18 : vector<8x5xi1>, vector<8x5xf32>
    %cst_7 = arith.constant dense<0.000000e+00> : vector<8xf32>
    %20 = vector.multi_reduction <add>, %19, %cst_7 [1] : vector<8x5xf32> to vector<8xf32>
    %21 = vector.shape_cast %20 : vector<8xf32> to vector<8x1xf32>
    %cst_8 = arith.constant 0.000000e+00 : f32
    %22 = vector.shape_cast %5 : vector<1x5xf32> to vector<1x5xf32>
    %23 = vector.broadcast %22 : vector<1x5xf32> to vector<8x5xf32>
    %24 = vector.broadcast %cst_8 : f32 to vector<8x5xf32>
    %25 = arith.select %17, %23, %24 : vector<8x5xi1>, vector<8x5xf32>
    %cst_9 = arith.constant dense<0.000000e+00> : vector<8xf32>
    %26 = vector.multi_reduction <add>, %25, %cst_9 [1] : vector<8x5xf32> to vector<8xf32>
    %27 = vector.shape_cast %26 : vector<8xf32> to vector<8x1xf32>
    %cst_10 = arith.constant 0.000000e+00 : f32
    %28 = vector.broadcast %cst_10 : f32 to vector<8x1xf32>
    %29 = arith.select %14, %27, %28 : vector<8x1xi1>, vector<8x1xf32>
    %cst_11 = arith.constant 0.000000e+00 : f32
    %30 = vector.broadcast %cst_11 : f32 to vector<8x1xf32>
    %31 = arith.subf %30, %29 : vector<8x1xf32>
    %32 = arith.mulf %31, %21 : vector<8x1xf32>
    %cst_12 = arith.constant 0.000000e+00 : f32
    %33 = vector.broadcast %cst_12 : f32 to vector<8x1xf32>
    %34 = arith.select %14, %32, %33 : vector<8x1xi1>, vector<8x1xf32>
    %c0_13 = arith.constant 0 : index
    %c0_14 = arith.constant 0 : index
    %35 = vector.load %arg5[%c0_13, %c0_14] : memref<1x1xf32, #tpu.memory_space<vmem>>, vector<1x1xf32>
    %cst_15 = arith.constant dense<0.000000e+00> : vector<1xf32>
    %36 = vector.multi_reduction <add>, %34, %cst_15 [0] : vector<8x1xf32> to vector<1xf32>
    %37 = vector.shape_cast %36 : vector<1xf32> to vector<1x1xf32>
    %38 = arith.addf %35, %37 : vector<1x1xf32>
    %c0_16 = arith.constant 0 : index
    %c0_17 = arith.constant 0 : index
    %39 = vector.load %arg5[%c0_16, %c0_17] : memref<1x1xf32, #tpu.memory_space<vmem>>, vector<1x1xf32>
    tpu.vector_store %arg5[%c0_16, %c0_17], %38 {strides = array<i32>} : memref<1x1xf32, #tpu.memory_space<vmem>>, vector<1x1xf32>,
    %c0_18 = arith.constant 0 : index
    %c0_19 = arith.constant 0 : index
    %40 = vector.load %arg6[%c0_18, %c0_19] : memref<1x1xf32, #tpu.memory_space<vmem>>, vector<1x1xf32>
    %cst_20 = arith.constant dense<0.000000e+00> : vector<1xf32>
    %41 = vector.multi_reduction <add>, %29, %cst_20 [0] : vector<8x1xf32> to vector<1xf32>
    %42 = vector.shape_cast %41 : vector<1xf32> to vector<1x1xf32>
    %43 = arith.addf %40, %42 : vector<1x1xf32>
    %c0_21 = arith.constant 0 : index
    %c0_22 = arith.constant 0 : index
    %44 = vector.load %arg6[%c0_21, %c0_22] : memref<1x1xf32, #tpu.memory_space<vmem>>, vector<1x1xf32>
    tpu.vector_store %arg6[%c0_21, %c0_22], %43 {strides = array<i32>} : memref<1x1xf32, #tpu.memory_space<vmem>>, vector<1x1xf32>,
    %c0_i32_23 = arith.constant 0 : i32
    %45 = arith.cmpi eq, %arg0, %c0_i32_23 : i32
    %46 = arith.extui %45 : i1 to i32
    %c0_i32_24 = arith.constant 0 : i32
    %47 = arith.cmpi ne, %46, %c0_i32_24 : i32
    scf.if %47 {
      %c0_25 = arith.constant 0 : index
      %c0_26 = arith.constant 0 : index
      %48 = vector.load %arg5[%c0_25, %c0_26] : memref<1x1xf32, #tpu.memory_space<vmem>>, vector<1x1xf32>
      %c0_27 = arith.constant 0 : index
      %c0_28 = arith.constant 0 : index
      %49 = vector.load %arg6[%c0_27, %c0_28] : memref<1x1xf32, #tpu.memory_space<vmem>>, vector<1x1xf32>
      %50 = arith.divf %48, %49 : vector<1x1xf32>
      %c0_29 = arith.constant 0 : index
      %c0_30 = arith.constant 0 : index
      %51 = vector.load %arg4[%c0_29, %c0_30] : memref<1x1xf32, #tpu.memory_space<vmem>>, vector<1x1xf32>
      tpu.vector_store %arg4[%c0_29, %c0_30], %50 {strides = array<i32>} : memref<1x1xf32, #tpu.memory_space<vmem>>, vector<1x1xf32>,
    } else {
    }
    return
  }
  func.func @transform_0(%arg0: i32) -> (i32, i32) {
    %c0_i32 = arith.constant 0 : i32
    %c0_i32_0 = arith.constant 0 : i32
    return %arg0, %c0_i32 : i32, i32
  }
  func.func @transform_1(%arg0: i32) -> (i32, i32) {
    %c0_i32 = arith.constant 0 : i32
    %c0_i32_0 = arith.constant 0 : i32
    return %arg0, %c0_i32 : i32, i32
  }
  func.func @transform_2(%arg0: i32) -> (i32, i32) {
    %c0_i32 = arith.constant 0 : i32
    %c0_i32_0 = arith.constant 0 : i32
    %c0_i32_1 = arith.constant 0 : i32
    return %c0_i32, %c0_i32_0 : i32, i32
  }
  func.func @transform_3(%arg0: i32) -> (i32, i32) {
    %c0_i32 = arith.constant 0 : i32
    %c0_i32_0 = arith.constant 0 : i32
    %c0_i32_1 = arith.constant 0 : i32
    return %c0_i32, %c0_i32_0 : i32, i32
  }
}

</mosaic_0001>

<bundles_post_ra>
// kernel: tpu_custom_call.1
= control target key start
LH: loop header
LB: loop body
LE: loop exit
PB: predicated region body
PF: predicated region fallthrough
CT: control target
= control target key end

     0   :  { %s187_s0 = inlined_call_operand.vmem [shape: f32[8,5], index: 0, kind: input, shape index: {}]   ;;  %s188_s1 = inlined_call_operand.vmem [shape: s32[8,1], index: 1, kind: input, shape index: {}]   ;;  %s189_s2 = inlined_call_operand.vmem [shape: f32[1,5], index: 2, kind: input, shape index: {}]   ;;  %s190_s3 = inlined_call_operand.hbm [shape: f32[1,1], index: 3, kind: output, shape index: {}]  }
   0x1   :  { %v23_v0 = vld [vmem:[%s188_s1] sm:$0xff] }
   0x2   :  { %8 = vsyncpa [#allocation5], 0  ;;  %v147_v1 = vmov 0   ;;  %v33_v2 = vlaneseq  ;;  %v118_v4 = vld [vmem:[%s189_s2] ss:$0 sm:$0xff]  ;;  %vm40_vm0 = vcmask 39936  }
   0x3   :  { %117 = vset.pattern.permute.xlu0 %v147_v1  ;;  %v22_v5 = vld [vmem:[%s187_s0] sm:$0xff]  ;;  %vm19_vm2 = vcmask 0   ;;  %v148_v11 = vmov 0.0   ;;  %vm31_vm3 = vcmp.ne.s32.totalorder %v23_v0, 4294967196  ;;  %vm56_vm4 = vcmask 7168   ;;  %s149_s0 = smov [#allocation4]  }
   0x4   :  { %36 = vperm.xlu0 %117, %v23_v0   ;;  %v34_v3 = vand.u32 127, %v33_v2  ;;  %21 = vst.msk [vmem:[#allocation3] sm:$0x1] %vm19_vm2, %v148_v11  ;;  %s103_s1 = sshll.u32 %s149_s0, 4  ;;  %s105_s19 = sshll.u32 %s190_s3, 4  ;;  %s104_s1 = int_to_ptr.vmem [resolvable:$true] %s103_s1  ;;  %s106_s19 = int_to_ptr.hbm [resolvable:$true] %s105_s19 }
   0x5   :  { %20 = vst.msk [vmem:[#allocation2] sm:$0x1] %vm19_vm2, %v148_v11 }
   0xb   :  { %v67_v27 = vld [vmem:[#allocation3] sm:$0x1] }
   0xc   :  { %v55_v33 = vld [vmem:[#allocation2] sm:$0x1] }
  0x76   :  { %v37_v6 = vpop.permute.xlu0 %36 }
  0x77   :  { %vm38_vm1 = vcmp.eq.s32.totalorder %v34_v3, %v37_v6 }
  0x78   :  { %v47_v7 = vsel %vm38_vm1, %v118_v4, 0.0  ;;  %v39_v8 = vsel %vm38_vm1, %v22_v5, 0.0 }
  0x79   :  { %v48_v9 = vsel %vm40_vm0, %v47_v7, 0.0  ;;  %v41_v10 = vsel %vm40_vm0, %v39_v8, 0.0 }
  0x7a   :  { %49 = vadd.xlane.f32.xlu0 %v48_v9  ;;  %42 = vadd.xlane.f32.xlu1 %v41_v10 }
  0xed   :  { %v50_v12 = vpop.xlane.xlu0 %49  ;;  %v43_v17 = vpop.xlane.xlu1 %42 }
  0xee   :  { %v51_v13 = vsel %vm31_vm3, %v50_v12, 0.0 }
  0xef   :  { %v52_v14 = vsub.f32 0.0, %v51_v13  ;;  %v68_v15 = vsel %vm56_vm4, %v51_v13, 0.0 }
  0xf0   :  { %v69_v16 = vrot.slane %v68_v15, 4 }
  0xf1   :  { %v53_v18 = vmul.f32 %v52_v14, %v43_v17 }
  0xf2   :  { %v70_v19 = vadd.f32 %v69_v16, %v68_v15 }
  0xf3   :  { %v54_v20 = vsel %vm31_vm3, %v53_v18, 0.0 }
  0xf4   :  { %v71_v21 = vrot.slane %v70_v19, 2  ;;  %v57_v22 = vsel %vm56_vm4, %v54_v20, 0.0 }
  0xf5   :  { %v58_v23 = vrot.slane %v57_v22, 4 }
  0xf6   :  { %v72_v24 = vadd.f32 %v71_v21, %v70_v19 }
  0xf7   :  { %v59_v25 = vadd.f32 %v58_v23, %v57_v22 }
  0xf8   :  { %v73_v26 = vrot.slane %v72_v24, 1 }
  0xf9   :  { %v60_v28 = vrot.slane %v59_v25, 2 }
  0xfa   :  { %v74_v29 = vadd.f32 %v73_v26, %v72_v24 }
  0xfb   :  { %v61_v30 = vadd.f32 %v60_v28, %v59_v25 }
  0xfc   :  { %v75_v31 = vadd.f32 %v74_v29, %v67_v27 }
  0xfd   :  { %v62_v32 = vrot.slane %v61_v30, 1 }
  0xfe   :  { %76 = vst.msk [vmem:[#allocation3] sm:$0x1] %vm19_vm2, %v75_v31 }
  0xff   :  { %v63_v34 = vadd.f32 %v62_v32, %v61_v30 }
 0x101   :  { %v64_v35 = vadd.f32 %v63_v34, %v55_v33 }
 0x103   :  { %66 = vst.msk [vmem:[#allocation2] sm:$0x1] %vm19_vm2, %v64_v35 }
 0x105   :  { %v81_v36 = vld [vmem:[#allocation3] sm:$0x1] }
 0x106   :  { %119 = vrcp.f32 %v81_v36  ;;  %v93_v40 = vand.u32 2147483648, %v81_v36  ;;  %v91_v42 = vand.u32 2147483647, %v81_v36  ;;  %vm87_vm6 = vweird.f32 %v81_v36 }
 0x108   :  { %v94_v44 = vor.u32 1.1754944e-38, %v93_v40  ;;  %vm92_vm8 = vcmp.eq.f32.partialorder %v91_v42, 8.507059e+37 }
 0x10a   :  { %v80_v46 = vld [vmem:[#allocation2] sm:$0x1] }
 0x10c   :  { %v120_v37 = vpop.eup %119 }
 0x10d   :  { %v83_v38 = vmul.f32 %v120_v37, %v81_v36  ;;  %vm88_vm5 = vweird.f32 %v120_v37 }
 0x10e   :  { %vm89_vm7 = vmor %vm87_vm6, %vm88_vm5 }
 0x10f   :  { %v84_v39 = vsub.f32 1.0, %v83_v38 }
 0x111   :  { %v85_v41 = vmul.f32 %v120_v37, %v84_v39 }
 0x113   :  { %v86_v43 = vadd.f32 %v120_v37, %v85_v41 }
 0x115   :  { %v90_v45 = vsel %vm89_vm7, %v120_v37, %v86_v43 }
 0x116   :  { %v95_v47 = vsel %vm92_vm8, %v94_v44, %v90_v45 }
 0x117   :  { %v96_v48 = vmul.f32 %v95_v47, %v80_v46 }
 0x119   :  { %97 = vst.msk [vmem:[#allocation4] sm:$0x1] %vm19_vm2, %v96_v48 }
 0x11a   :  { %108 = dma.vmem_to_hbm [thread:$0]  %s104_s1, 16, %s106_s19, [#allocation5]  }
 0x11b   :  { %145 = dma.done.wait [#allocation5], 16  }
 0x11c   :  { %146 = vsyncadd [#allocation5], 4294967280 }
 0x11d   :  { %113 = vsyncpa [#allocation5], 1 }

</bundles_post_ra>
